<compile_context>
chip_gen: v7x
topology: tpu7x:2x2x1
jax: 0.10.0
libtpu: 0.0.40
codegen_flags: <defaults>
</compile_context>

<pallas_src>
import math
from typing import NamedTuple

import jax
import jax.numpy as jnp
from jax.experimental import pallas as pl
from jax.experimental.pallas import tpu as pltpu


def _round_up(a: int, b: int) -> int:
    return (a + b - 1) // b * b


def _cdiv(a: int, b: int) -> int:
    return (a + b - 1) // b


def _vmem_capacity_bytes() -> int:
    try:
        return int(pltpu.get_tpu_info().vmem_capacity_bytes)
    except Exception:
        return 64 * 1024 * 1024  # v7x per-TC size: safe floor for every gen


def _footprint_bytes(tm, tn, Dp, n_h, x_sz, w_sz, out_sz):
    """Per-step VMEM bytes: double-buffered tiles + scratch + f32 temporaries."""
    return (2 * tm * Dp * x_sz                      # x tile
            + 2 * Dp * (2 * tn) * w_sz              # fused [Wg|Wv] tile
            + 2 * (2 * tn) * 4                      # fused b1 tile (f32)
            + 2 * tn * Dp * w_sz                    # W2 tile
            + 2 * Dp * 4                            # b2 (f32)
            + 2 * tm * Dp * out_sz                  # output tile
            + (tm * Dp * 4 if n_h > 1 else 0)       # f32 accumulator scratch
            + 6 * tm * tn * 4)                      # f32 elementwise temporaries


def _pad2d(a, rows, cols, dtype):
    r, c = a.shape
    a = a.astype(dtype)
    if (r, c) == (rows, cols):
        return a
    return jnp.zeros((rows, cols), dtype).at[:r, :c].set(a)


class SwiGLUParams(NamedTuple):
    w1gv: jax.Array   # (Dp, n_h * 2 * tn) per-tile [gate | value] interleave (bf16)
    b1gv: jax.Array   # (1,  n_h * 2 * tn) f32
    w2p: jax.Array    # (Hp, Dp)           bf16
    b2p: jax.Array    # (1,  Dp)           f32
    dim: int
    hidden: int
    tn: int
    tm_max: int
    vmem_cap: int


def prepare_swiglu_params(w1, b1, w2, b2, *, compute_dtype=jnp.bfloat16):
    """One-time (per parameter set) padding / fusing / casting.

    w1: (D, 2*H) = [W_gate | W_value]  (transposed vs. torch Linear.weight)
    b1: (2*H,)    w2: (H, D)    b2: (D,)
    """
    D, H2 = w1.shape
    H = H2 // 2
    Dp = _round_up(D, 128)
    cap = _vmem_capacity_bytes()
    budget = int(cap * 0.85)
    w_sz = jnp.dtype(compute_dtype).itemsize

    # Generation-aware tile targets: large tm amortizes weight streaming
    # (v5e ridge ~240, v7x ~310, v6e ~700 flop per bf16 weight byte).
    tm_max = 1024 if cap >= 100 * 1024 * 1024 else 512
    tn = min(512, _round_up(H, 128))
    # Shrink tn first (doesn't hurt weight reuse), then tm, to fit the budget.
    while tn > 128 and _footprint_bytes(tm_max, tn, Dp, 2, w_sz, w_sz, 4) > budget:
        tn -= 128
    while tm_max > 64 and _footprint_bytes(tm_max, tn, Dp, 2, w_sz, w_sz, 4) > budget:
        tm_max //= 2

    Hp = _round_up(H, tn)
    n_h = Hp // tn

    wg = _pad2d(w1[:, :H], Dp, Hp, compute_dtype)
    wv = _pad2d(w1[:, H:], Dp, Hp, compute_dtype)
    # Tile j of the fused weight holds [Wg[:, j*tn:(j+1)*tn] | Wv[:, same]]:
    # one contiguous (Dp, 2*tn) DMA + one MXU contraction per hidden tile.
    w1gv = jnp.concatenate(
        [wg.reshape(Dp, n_h, tn), wv.reshape(Dp, n_h, tn)], axis=2
    ).reshape(Dp, n_h * 2 * tn)

    bg = _pad2d(b1[:H].reshape(1, H), 1, Hp, jnp.float32)
    bv = _pad2d(b1[H:].reshape(1, H), 1, Hp, jnp.float32)
    b1gv = jnp.concatenate(
        [bg.reshape(n_h, tn), bv.reshape(n_h, tn)], axis=1
    ).reshape(1, n_h * 2 * tn)

    w2p = _pad2d(w2, Hp, Dp, compute_dtype)
    b2p = _pad2d(b2.reshape(1, D), 1, Dp, jnp.float32)

    return SwiGLUParams(w1gv, b1gv, w2p, b2p, D, H, tn, tm_max, cap)


def _silu_gate_value(gv, tn):
    gate = gv[:, :tn]          # lane-aligned static slices (tn % 128 == 0)
    value = gv[:, tn:]
    # Exact sigmoid: exp on the EUP, one divide on the VPU -- hidden under MXU.
    return gate * (1.0 / (1.0 + jnp.exp(-gate))) * value


def _swiglu_kernel_single(x_ref, w1_ref, b1_ref, w2_ref, b2_ref, o_ref):
    # Single hidden tile: no accumulator scratch, write straight to o_ref.
    tn = w2_ref.shape[0]
    gv = jnp.dot(x_ref[...], w1_ref[...],
                 preferred_element_type=jnp.float32) + b1_ref[...]
    h = _silu_gate_value(gv, tn)
    out = jnp.dot(h.astype(w2_ref.dtype), w2_ref[...],
                  preferred_element_type=jnp.float32)
    o_ref[...] = (out + b2_ref[...]).astype(o_ref.dtype)


def _swiglu_kernel_acc(x_ref, w1_ref, b1_ref, w2_ref, b2_ref, o_ref, acc_ref):
    j = pl.program_id(1)

    @pl.when(j == 0)
    def _():
        acc_ref[...] = jnp.zeros_like(acc_ref)

    tn = w2_ref.shape[0]
    gv = jnp.dot(x_ref[...], w1_ref[...],
                 preferred_element_type=jnp.float32) + b1_ref[...]
    h = _silu_gate_value(gv, tn)
    acc_ref[...] += jnp.dot(h.astype(w2_ref.dtype), w2_ref[...],
                            preferred_element_type=jnp.float32)

    @pl.when(j == pl.num_programs(1) - 1)
    def _():
        o_ref[...] = (acc_ref[...] + b2_ref[...]).astype(o_ref.dtype)


def swiglu_pallas(x, params: SwiGLUParams):
    """SwiGLU forward.  x: (..., D) with D == params.dim."""
    orig_shape = x.shape
    D, H, tn = params.dim, params.hidden, params.tn
    Dp = params.w1gv.shape[0]
    Hp = params.w2p.shape[0]
    n_h = Hp // tn
    M = math.prod(orig_shape[:-1])
    out_dtype = x.dtype
    cd = params.w1gv.dtype  # MXU compute dtype (bf16)

    # --- M tiling: clamp to tm_max; keep >=2 tiles so both v7x TCs get work.
    tm = min(params.tm_max, _round_up(M, 8))
    if M > 8 and _round_up(M, tm) // tm < 2:
        tm = _round_up(_cdiv(M, 2), 8)
    Mp = _round_up(M, tm)
    n_m = Mp // tm

    # --- x: cast to bf16 for the MXU, pad to lane/sublane-dense tiles.
    x2 = x.reshape(M, D).astype(cd)
    if (Mp, Dp) != (M, D):
        x2 = jnp.zeros((Mp, Dp), cd).at[:M, :D].set(x2)

    # --- VMEM accounting: limit always >= footprint, no hard 64 MiB cap.
    x_sz = jnp.dtype(cd).itemsize
    w_sz = jnp.dtype(cd).itemsize
    out_sz = jnp.dtype(out_dtype).itemsize
    footprint = _footprint_bytes(tm, tn, Dp, n_h, x_sz, w_sz, out_sz)
    vmem_limit = min(params.vmem_cap,
                     max(int(footprint * 1.1), 32 * 1024 * 1024))
    vmem_limit = int(max(vmem_limit, footprint))

    cost = pl.CostEstimate(
        flops=2 * M * D * (2 * H) + 2 * M * H * D,
        transcendentals=2 * M * H,
        bytes_accessed=int(M * D * (jnp.dtype(x.dtype).itemsize + out_sz)
                           + n_m * (params.w1gv.size + params.w2p.size) * w_sz
                           + (params.b1gv.size + params.b2p.size) * 4))

    if n_h == 1:
        grid_spec = pltpu.PrefetchScalarGridSpec(
            num_scalar_prefetch=0,
            grid=(n_m,),
            in_specs=[
                pl.BlockSpec((tm, Dp), lambda i: (i, 0)),        # x rows
                pl.BlockSpec((Dp, 2 * tn), lambda i: (0, 0)),    # fused W1
                pl.BlockSpec((1, 2 * tn), lambda i: (0, 0)),     # fused b1
                pl.BlockSpec((tn, Dp), lambda i: (0, 0)),        # W2
                pl.BlockSpec((1, Dp), lambda i: (0, 0)),         # b2
            ],
            out_specs=pl.BlockSpec((tm, Dp), lambda i: (i, 0)),
        )
        kernel = _swiglu_kernel_single
        dims = ("parallel",)
    else:
        grid_spec = pltpu.PrefetchScalarGridSpec(
            num_scalar_prefetch=0,
            grid=(n_m, n_h),
            in_specs=[
                pl.BlockSpec((tm, Dp), lambda i, j: (i, 0)),      # x rows
                pl.BlockSpec((Dp, 2 * tn), lambda i, j: (0, j)),  # fused W1 tile
                pl.BlockSpec((1, 2 * tn), lambda i, j: (0, j)),   # fused b1 tile
                pl.BlockSpec((tn, Dp), lambda i, j: (j, 0)),      # W2 rows
                pl.BlockSpec((1, Dp), lambda i, j: (0, 0)),       # b2 (constant)
            ],
            out_specs=pl.BlockSpec((tm, Dp), lambda i, j: (i, 0)),
            scratch_shapes=[pltpu.VMEM((tm, Dp), jnp.float32)],
        )
        kernel = _swiglu_kernel_acc
        dims = ("parallel", "arbitrary")

    out = pl.pallas_call(
        kernel,
        out_shape=jax.ShapeDtypeStruct((Mp, Dp), out_dtype),
        grid_spec=grid_spec,
        compiler_params=pltpu.CompilerParams(
            dimension_semantics=dims,
            vmem_limit_bytes=vmem_limit),
        cost_estimate=cost,
    )(x2, params.w1gv, params.b1gv, params.w2p, params.b2p)

    return out[:M, :D].reshape(orig_shape)


def swiglu_ref(x, w1, b1, w2, b2):
    proj = x @ w1 + b1
    gate, value = jnp.split(proj, 2, axis=-1)
    h = jax.nn.silu(gate) * value
    return h @ w2 + b2


def _make_params(key, dim, hidden, dtype=jnp.float32):
    k1, kb1, k2, kb2 = jax.random.split(key, 4)
    w1 = jax.random.uniform(k1, (dim, 2 * hidden), dtype=dtype,
                            minval=-1.0, maxval=1.0) / jnp.sqrt(dim)
    b1 = jax.random.uniform(kb1, (2 * hidden,), dtype=dtype,
                            minval=-1.0, maxval=1.0) / jnp.sqrt(dim)
    w2 = jax.random.uniform(k2, (hidden, dim), dtype=dtype,
                            minval=-1.0, maxval=1.0) / jnp.sqrt(hidden)
    b2 = jax.random.uniform(kb2, (dim,), dtype=dtype,
                            minval=-1.0, maxval=1.0) / jnp.sqrt(hidden)
    return w1, b1, w2, b2


if __name__ == "__main__":
    key = jax.random.PRNGKey(0)
    kx1, kp1, kx2, kp2 = jax.random.split(key, 4)

    # --- Test 1: module defaults (dim=32 -> hidden=128); single-H-tile path.
    B, S, dim = 2, 8, 32
    hidden = dim * 4
    x = jax.random.normal(kx1, (B, S, dim), dtype=jnp.float32)
    w1, b1, w2, b2 = _make_params(kp1, dim, hidden)
    params = prepare_swiglu_params(w1, b1, w2, b2)      # one-time prep
    y = jax.block_until_ready(swiglu_pallas(x, params))
    y_ref = swiglu_ref(x, w1, b1, w2, b2)
    assert y.shape == (B, S, dim)
    err1 = float(jnp.max(jnp.abs(y - y_ref)))
    # bf16 MXU inputs -> tolerance covers bf16 rounding of x/weights/h.
    assert jnp.allclose(y, y_ref, atol=3e-2, rtol=3e-2), f"mismatch: {err1}"

    # --- Test 2: larger hidden (dim=256 -> hidden=1024) exercises the
    #             multi-hidden-tile accumulator path.
    dim2 = 256
    hidden2 = dim2 * 4
    x_big = jax.random.normal(kx2, (B, S, dim2), dtype=jnp.float32)
    w1b, b1b, w2b, b2b = _make_params(kp2, dim2, hidden2)
    params_big = prepare_swiglu_params(w1b, b1b, w2b, b2b)
    y_big = jax.block_until_ready(swiglu_pallas(x_big, params_big))
    y_big_ref = swiglu_ref(x_big, w1b, b1b, w2b, b2b)
    assert y_big.shape == (B, S, dim2)
    err2 = float(jnp.max(jnp.abs(y_big - y_big_ref)))
    assert jnp.allclose(y_big, y_big_ref, atol=3e-2, rtol=3e-2), f"mismatch: {err2}"

    print("KERNEL_OK")
</pallas_src>

<mosaic_0001>
module attributes {stable_mosaic.version = 11 : i64} {
  func.func @_swiglu_kernel_single(%arg0: i32, %arg1: memref<8x128xbf16, #tpu.memory_space<vmem>>, %arg2: memref<128x256xbf16, #tpu.memory_space<vmem>>, %arg3: memref<1x256xf32, #tpu.memory_space<vmem>>, %arg4: memref<128x128xbf16, #tpu.memory_space<vmem>>, %arg5: memref<1x128xf32, #tpu.memory_space<vmem>>, %arg6: memref<8x128xf32, #tpu.memory_space<vmem>>) attributes {dimension_semantics = [#tpu.dimension_semantics<parallel>], iteration_bounds = array<i64: 2>, scalar_prefetch = 0 : i64, scratch_operands = 0 : i64, tpu.core_type = #tpu.core_type<tc>, window_params = [{transform_indices = @transform_0, window_bounds = array<i64: 8, 128>}, {pipeline_mode = #tpu.pipeline_mode<synchronous>, transform_indices = @transform_1, window_bounds = array<i64: 128, 256>}, {pipeline_mode = #tpu.pipeline_mode<synchronous>, transform_indices = @transform_2, window_bounds = array<i64: 1, 256>}, {pipeline_mode = #tpu.pipeline_mode<synchronous>, transform_indices = @transform_3, window_bounds = array<i64: 128, 128>}, {pipeline_mode = #tpu.pipeline_mode<synchronous>, transform_indices = @transform_4, window_bounds = array<i64: 1, 128>}, {transform_indices = @transform_5, window_bounds = array<i64: 8, 128>}]} {
    %c0 = arith.constant 0 : index
    %c0_0 = arith.constant 0 : index
    %0 = vector.load %arg1[%c0, %c0_0] : memref<8x128xbf16, #tpu.memory_space<vmem>>, vector<8x128xbf16>
    %c0_1 = arith.constant 0 : index
    %c0_2 = arith.constant 0 : index
    %1 = vector.load %arg2[%c0_1, %c0_2] : memref<128x256xbf16, #tpu.memory_space<vmem>>, vector<128x256xbf16>
    %cst = arith.constant dense<0.000000e+00> : vector<8x256xf32>
    %2 = tpu.matmul %0, %1, %cst {dimension_numbers = #tpu.dot_dimension_numbers<[1], [0], [0], [1], [0, 0, 1, 1], [], []>} : vector<8x128xbf16>, vector<128x256xbf16>, vector<8x256xf32> -> vector<8x256xf32>
    %c0_3 = arith.constant 0 : index
    %c0_4 = arith.constant 0 : index
    %3 = vector.load %arg3[%c0_3, %c0_4] : memref<1x256xf32, #tpu.memory_space<vmem>>, vector<1x256xf32>
    %4 = vector.broadcast %3 : vector<1x256xf32> to vector<8x256xf32>
    %5 = arith.addf %2, %4 : vector<8x256xf32>
    %6 = vector.extract_strided_slice %5 {offsets = [0, 0], sizes = [8, 128], strides = [1, 1]} : vector<8x256xf32> to vector<8x128xf32>
    %7 = vector.extract_strided_slice %5 {offsets = [0, 128], sizes = [8, 128], strides = [1, 1]} : vector<8x256xf32> to vector<8x128xf32>
    %cst_5 = arith.constant 0.000000e+00 : f32
    %8 = vector.broadcast %cst_5 : f32 to vector<8x128xf32>
    %9 = arith.subf %8, %6 : vector<8x128xf32>
    %10 = math.exp %9 : vector<8x128xf32>
    %cst_6 = arith.constant 1.000000e+00 : f32
    %11 = vector.broadcast %cst_6 : f32 to vector<8x128xf32>
    %12 = arith.addf %11, %10 : vector<8x128xf32>
    %cst_7 = arith.constant 1.000000e+00 : f32
    %13 = vector.broadcast %cst_7 : f32 to vector<8x128xf32>
    %14 = arith.divf %13, %12 : vector<8x128xf32>
    %15 = arith.mulf %6, %14 : vector<8x128xf32>
    %16 = arith.mulf %15, %7 : vector<8x128xf32>
    %17 = arith.truncf %16 : vector<8x128xf32> to vector<8x128xbf16>
    %c0_8 = arith.constant 0 : index
    %c0_9 = arith.constant 0 : index
    %18 = vector.load %arg4[%c0_8, %c0_9] : memref<128x128xbf16, #tpu.memory_space<vmem>>, vector<128x128xbf16>
    %cst_10 = arith.constant dense<0.000000e+00> : vector<8x128xf32>
    %19 = tpu.matmul %17, %18, %cst_10 {dimension_numbers = #tpu.dot_dimension_numbers<[1], [0], [0], [1], [0, 0, 1, 1], [], []>} : vector<8x128xbf16>, vector<128x128xbf16>, vector<8x128xf32> -> vector<8x128xf32>
    %c0_11 = arith.constant 0 : index
    %c0_12 = arith.constant 0 : index
    %20 = vector.load %arg5[%c0_11, %c0_12] : memref<1x128xf32, #tpu.memory_space<vmem>>, vector<1x128xf32>
    %21 = vector.broadcast %20 : vector<1x128xf32> to vector<8x128xf32>
    %22 = arith.addf %19, %21 : vector<8x128xf32>
    %c0_13 = arith.constant 0 : index
    %c0_14 = arith.constant 0 : index
    %23 = vector.load %arg6[%c0_13, %c0_14] : memref<8x128xf32, #tpu.memory_space<vmem>>, vector<8x128xf32>
    tpu.vector_store %arg6[%c0_13, %c0_14], %22 {strides = array<i32>} : memref<8x128xf32, #tpu.memory_space<vmem>>, vector<8x128xf32>,
    return
  }
  func.func @transform_0(%arg0: i32) -> (i32, i32) {
    %c0_i32 = arith.constant 0 : i32
    %c0_i32_0 = arith.constant 0 : i32
    return %arg0, %c0_i32 : i32, i32
  }
  func.func @transform_1(%arg0: i32) -> (i32, i32) {
    %c0_i32 = arith.constant 0 : i32
    %c0_i32_0 = arith.constant 0 : i32
    %c0_i32_1 = arith.constant 0 : i32
    return %c0_i32, %c0_i32_0 : i32, i32
  }
  func.func @transform_2(%arg0: i32) -> (i32, i32) {
    %c0_i32 = arith.constant 0 : i32
    %c0_i32_0 = arith.constant 0 : i32
    %c0_i32_1 = arith.constant 0 : i32
    return %c0_i32, %c0_i32_0 : i32, i32
  }
  func.func @transform_3(%arg0: i32) -> (i32, i32) {
    %c0_i32 = arith.constant 0 : i32
    %c0_i32_0 = arith.constant 0 : i32
    %c0_i32_1 = arith.constant 0 : i32
    return %c0_i32, %c0_i32_0 : i32, i32
  }
  func.func @transform_4(%arg0: i32) -> (i32, i32) {
    %c0_i32 = arith.constant 0 : i32
    %c0_i32_0 = arith.constant 0 : i32
    %c0_i32_1 = arith.constant 0 : i32
    return %c0_i32, %c0_i32_0 : i32, i32
  }
  func.func @transform_5(%arg0: i32) -> (i32, i32) {
    %c0_i32 = arith.constant 0 : i32
    %c0_i32_0 = arith.constant 0 : i32
    return %arg0, %c0_i32 : i32, i32
  }
}

</mosaic_0001>

<bundles_post_ra>
// kernel: tpu_custom_call.1
= control target key start
LH: loop header
LB: loop body
LE: loop exit
PB: predicated region body
PF: predicated region fallthrough
CT: control target
= control target key end

     0   :  { %10 = vsyncpa [#allocation3], 0  ;;  %s1262_s0 = inlined_call_operand.hbm [shape: bf16[16,128], index: 0, kind: input, shape index: {}]   ;;  %s1263_s1 = inlined_call_operand.hbm [shape: bf16[128,256], index: 1, kind: input, shape index: {}]   ;;  %s1264_s2 = inlined_call_operand.vmem [shape: f32[1,256], index: 2, kind: input, shape index: {}]   ;;  %s1265_s3 = inlined_call_operand.hbm [shape: bf16[128,128], index: 3, kind: input, shape index: {}]   ;;  %s1266_s4 = inlined_call_operand.vmem [shape: f32[1,128], index: 4, kind: input, shape index: {}]   ;;  %s1267_s5 = inlined_call_operand.hbm [shape: f32[16,128], index: 5, kind: output, shape index: {}]  }
   0x1   :  { %12 = vsyncpa [#allocation3 + $0x1], 0 }
   0x2   :  { %13 = vsyncpa [#allocation6], 0 }
   0x3   :  { %14 = vsyncpa [#allocation4], 0 }
   0x4   :  { %16 = vsyncpa [#allocation4 + $0x1], 0  ;;  %s1023_s18 = smov 0   ;;  %s1025_s19 = smov 0  }
   0x5   :  { %s1027_s20 = smov 0   ;;  %s1029_s21 = smov 0  }
   0x6 LB: > { %s1044_s22 = sadd.s32 4294967295, %s980_s21   ;;  %s644_s23 = sadd.s32 4294967294, %s980_s21   ;;  %s980_s21 = sphi %s1029_s21, %s1287_s21   ;;  %s976_s20 = sphi %s1027_s20, %s1286_s20   ;;  %s972_s19 = sphi %s1025_s19, %s1285_s19   ;;  %s968_s18 = sphi %s1023_s18, %s1284_s18  }
   0x7   : > { %p42_p0 = scmp.ne.s32.totalorder %s972_s19, %s968_s18  ;;  %p1268_p1 = scmp.eq.s32.totalorder %s1044_s22, 0 }
   0x8   : > { %p156_p3 = scmp.eq.s32.totalorder %s644_s23, 1  ;;  %p645_p5 = scmp.ge.s32.totalorder %s980_s21, 1 }
   0x9   : > { %p1053_p4 = por %p1268_p1, %p42_p0  ;;  %p163_p7 = scmp.lt.s32.totalorder %s980_s21, 3 }
   0xa   : > { %p1058_p6 = por %p156_p3, %p42_p0  ;;  %s982_s27 = smov [#allocation5]  }
   0xb   : > { %s1271_s24 = scalar_select %p1053_p4, 1, 0 }
   0xc   : > { %s1272_s25 = scalar_select %p1058_p6, 1, 0 }
   0xd   : > { %p1063_p8 = pnand %p645_p5, %p163_p7  ;;  %s175_s28 = sshll.u32 %s982_s27, 4  ;;  %s1067_s28 = int_to_ptr.vmem [resolvable:$true] %s175_s28 }
   0xe   : > { %s983_s30 = smov [#allocation7]   ;;  %s824_s9 = scalar_lea.hbm %s1263_s1, 2048 }
   0xf   : > { %p726_p9 = pneg %p1063_p8  ;;  %s191_s6 = sshll.u32 %s983_s30, 4  ;;  %s1078_s6 = int_to_ptr.vmem [resolvable:$true] %s191_s6 }
  0x10   : > { %p825_p12 = scmp.ne.s32.totalorder %s1263_s1, %s824_s9  ;;  %p831_p5 = scmp.lt.u32.totalorder %s824_s9, %s1263_s1 }
  0x11   : > { %p1074_p11 = pnand %p726_p9, %p1268_p1 }
  0x13   : > { %p826_p13 = pneg %p1074_p11 }
  0x15   : > { %p827_p0 = pnand %p826_p13, %p825_p12 }
  0x17   : > { %p828_p3 = pneg %p827_p0 }
  0x19   : > { %p833_p7 = pnand %p831_p5, %p828_p3 }
  0x1b   : > { %836 = shalt.err (!%p833_p7)
}
  0x1c   : > { %s837_s14 = scalar_lea.vmem %s1067_s28, 2048  ;;  %p845_p2 = scmp.lt.s32.totalorder %s1067_s28, %s1067_s28 }
  0x1d   : > { %p838_p9 = scmp.ne.s32.totalorder %s1067_s28, %s837_s14  ;;  %p846_p12 = scmp.lt.s32.totalorder %s837_s14, %s837_s14 }
  0x1f   : > { %p840_p10 = pnand %p838_p9, %p826_p13  ;;  %p847_p0 = por %p846_p12, %p845_p2 }
  0x21   : > { %p841_p1 = pneg %p840_p10 }
  0x23   : > { %p848_p6 = pnand %p847_p0, %p841_p1 }
  0x25   : > { %851 = shalt.err (!%p848_p6)
}
  0x26   : > { %s984_s15 = smov 128   ;;  %s985_s16 = smov 8  }
  0x27   : > { %729 = dma.hbm_to_vmem [thread:$0]  (!%p1074_p11), %s1263_s1, 2048, %s1067_s28, [#allocation6], %s984_s15, %s984_s15, %s985_s16  }
  0x28   : > { %s852_s7 = scalar_lea.hbm %s1265_s3, 1024 }
  0x29   : > { %p853_p2 = scmp.ne.s32.totalorder %s1265_s3, %s852_s7  ;;  %p859_p10 = scmp.lt.u32.totalorder %s852_s7, %s1265_s3 }
  0x2b   : > { %p855_p1 = pnand %p853_p2, %p826_p13 }
  0x2d   : > { %p856_p6 = pneg %p855_p1 }
  0x2f   : > { %p861_p3 = pnand %p859_p10, %p856_p6 }
  0x31   : > { %864 = shalt.err (!%p861_p3)
}
  0x32   : > { %s865_s28 = scalar_lea.vmem %s1078_s6, 1024  ;;  %p873_p12 = scmp.lt.s32.totalorder %s1078_s6, %s1078_s6 }
  0x33   : > { %p866_p5 = scmp.ne.s32.totalorder %s1078_s6, %s865_s28  ;;  %p874_p0 = scmp.lt.s32.totalorder %s865_s28, %s865_s28 }
  0x35   : > { %p868_p7 = pnand %p866_p5, %p826_p13  ;;  %p875_p2 = por %p874_p0, %p873_p12 }
  0x37   : > { %p869_p9 = pneg %p868_p7 }
  0x39   : > { %p876_p1 = pnand %p875_p2, %p869_p9 }
  0x3b   : > { %879 = shalt.err (!%p876_p1)
}
  0x3c   : > { %s986_s12 = smov 64   ;;  %s987_s13 = smov 4  }
  0x3d   : > { %732 = dma.hbm_to_vmem [thread:$0]  (!%p1074_p11), %s1265_s3, 1024, %s1078_s6, [#allocation6], %s986_s12, %s986_s12, %s987_s13  }
  0x3e   : > { %s1133_s16 = sadd.s32 1, %s980_s21   ;;  %s29_s23 = sadd.s32 1, %s976_s20 }
  0x3f   : > { %s26_s17 = ssub.s32 %s980_s21, %s1133_s16  ;;  %p36_p6 = scmp.ne.s32.totalorder %s976_s20, %s972_s19 }
  0x40   : > { %p27_p13 = scmp.eq.s32.totalorder %s26_s17, 0  ;;  %p37_p10 = scmp.eq.s32.totalorder %s980_s21, 0 }
  0x41   : > { %p1275_p5 = scmp.eq.s32.totalorder %s1044_s22, 1  ;;  %p743_p9 = scmp.lt.s32.totalorder %s980_s21, 2 }
  0x42   : > { %s1142_s27 = scalar_select %p27_p13, %s976_s20, %s29_s23  }
  0x43   : > { %p38_p3 = por %p37_p10, %p36_p6  ;;  %p1146_p7 = por %p1275_p5, %p36_p6 }
  0x44   : > { %s208_s29 = sand.u32 1, %s976_s20   ;;  %s650_s6 = sshll.u32 %s980_s21, 6 }
  0x45   : > { %s1276_s30 = scalar_select %p1146_p7, 1, 0 }
  0x46   : > { %s649_s7 = sshll.u32 %s208_s29, 2  ;;  %s1156_s10 = scalar_lea.hbm %s1262_s0, %s650_s6 }
  0x47   : > { %s212_s11 = scalar_lea.vmem [#allocation2], %s649_s7  ;;  %p1160_p11 = pnand %p743_p9, %p38_p3 }
  0x48   : > { %s219_s28 = sshll.u32 %s212_s11, 4  ;;  %s209_s13 = scalar_lea.sflag [#allocation3], %s208_s29  ;;  %s1158_s28 = int_to_ptr.vmem [resolvable:$true] %s219_s28 }
  0x49   : > { %s880_s14 = scalar_lea.hbm %s1156_s10, 64  ;;  %p882_p0 = pneg %p1160_p11 }
  0x4a   : > { %p881_p12 = scmp.ne.s32.totalorder %s1156_s10, %s880_s14  ;;  %s885_s23 = scalar_lea.hbm %s1262_s0, 128 }
  0x4b   : > { %p886_p13 = scmp.lt.u32.totalorder %s1156_s10, %s1262_s0  ;;  %p887_p6 = scmp.lt.u32.totalorder %s885_s23, %s880_s14 }
  0x4c   : > { %p883_p2 = pnand %p882_p0, %p881_p12  ;;  %p889_p3 = scmp.lt.u32.totalorder %s880_s14, %s1156_s10 }
  0x4d   : > { %p888_p10 = por %p887_p6, %p886_p13 }
  0x4e   : > { %p884_p1 = pneg %p883_p2 }
  0x4f   : > { %p890_p5 = por %p889_p3, %p888_p10 }
  0x51   : > { %p891_p9 = pnand %p890_p5, %p884_p1 }
  0x53   : > { %894 = shalt.err (!%p891_p9)
}
  0x54   : > { %s895_s29 = scalar_lea.vmem %s1158_s28, 64  ;;  %s988_s8 = smov [#allocation2]  }
  0x55   : > { %p896_p12 = scmp.ne.s32.totalorder %s1158_s28, %s895_s29  ;;  %s900_s9 = sshll.u32 %s988_s8, 4  ;;  %s901_s9 = int_to_ptr.vmem [resolvable:$false] %s900_s9 }
  0x56   : > { %s902_s11 = scalar_lea.vmem %s901_s9, 128  ;;  %p903_p4 = scmp.lt.s32.totalorder %s1158_s28, %s901_s9 }
  0x57   : > { %p898_p2 = pnand %p896_p12, %p882_p0  ;;  %p904_p13 = scmp.lt.s32.totalorder %s902_s11, %s895_s29 }
  0x59   : > { %p899_p7 = pneg %p898_p2  ;;  %p905_p6 = por %p904_p13, %p903_p4 }
  0x5b   : > { %p906_p10 = pnand %p905_p6, %p899_p7 }
  0x5d   : > { %909 = shalt.err (!%p906_p10)
}
  0x5e   : > { %736 = dma.hbm_to_vmem [thread:$0]  (!%p1160_p11), %s1156_s10, 64, %s1158_s28, %s209_s13  }
  0x5f   : > { %228 = sbr.rel (%p1063_p8) target bundleno = 615 (0x267), region = 40  ;;  %s1192_s14 = sand.u32 (!%p1063_p8), 1, %s972_s19  }
  0x60   : > { %s652_s15 = sshll.u32 (!%p1063_p8), %s1192_s14, 2  ;;  %s231_s17 = scalar_lea.sflag (!%p1063_p8), [#allocation3], %s1192_s14 }
  0x61   : > { %s1196_s23 = scalar_lea.vmem (!%p1063_p8), [#allocation2], %s652_s15  ;;  %p1278_p4 = scmp.ne.s32.totalorder (!%p1063_p8), %s1271_s24, 0 }
  0x66   : > { %955 = dma.done.wait (%p1278_p4), %s231_s17, 64  }
  0x67   : > { %957 = vsyncadd (%p1278_p4), %s231_s17, 4294967232  ;;  %p1279_p7 = scmp.eq.s32.totalorder %s1044_s22, 0 }
  0x69   : > { %959 = dma.done.wait (%p1279_p7), [#allocation6], 3072   ;;  %p1280_p8 = pmov %p1279_p7 }
  0x6a   : > { %v989_v0 = vmov 0   ;;  %v788_v1 = vld [vmem:[#allocation5 + $0x4] ss:$8 sps:$4 sm:$0xff]   ;;  %v790_v2 = vld [vmem:[#allocation5] ss:$8 sps:$4 sm:$0xff]   ;;  %v990_v19 = vmov 0.0   ;;  %v289_v27 = vlaneseq }
  0x6b   : > { %961 = vsyncadd (%p1280_p8), [#allocation6], 4294964224  ;;  %411 = vmatprep.mubr.bf16.mxu0 %v989_v0  ;;  %379 = vmatprep.subr.bf16.mxu0 %v788_v1  ;;  %v791_v3 = vld [vmem:[#allocation5 + $0x14] ss:$8 sps:$4 sm:$0xff]   ;;  %v793_v4 = vld [vmem:[#allocation5 + $0x10] ss:$8 sps:$4 sm:$0xff]  }
  0x6c   : > { %380 = vmatpush1.bf16.msra.mxu0 %v790_v2  ;;  %v794_v5 = vld [vmem:[#allocation5 + $0x24] ss:$8 sps:$4 sm:$0xff]   ;;  %v796_v6 = vld [vmem:[#allocation5 + $0x20] ss:$8 sps:$4 sm:$0xff]   ;;  %v797_v7 = vld [vmem:[#allocation5 + $0x34] ss:$8 sps:$4 sm:$0xff]   ;;  %694 = vmatprep.subr.bf16.mxu1 %v990_v19 }
  0x6d   : > { %381 = vmatprep.subr.bf16.mxu0 %v791_v3  ;;  %v799_v8 = vld [vmem:[#allocation5 + $0x30] ss:$8 sps:$4 sm:$0xff]   ;;  %v800_v9 = vld [vmem:[#allocation5 + $0x44] ss:$8 sps:$4 sm:$0xff]   ;;  %v802_v10 = vld [vmem:[#allocation5 + $0x40] ss:$8 sps:$4 sm:$0xff]  }
  0x6e   : > { %v803_v11 = vld [vmem:[#allocation5 + $0x54] ss:$8 sps:$4 sm:$0xff]   ;;  %v805_v12 = vld [vmem:[#allocation5 + $0x50] ss:$8 sps:$4 sm:$0xff]   ;;  %v806_v13 = vld [vmem:[#allocation5 + $0x64] ss:$8 sps:$4 sm:$0xff]  }
  0x6f   : > { %v808_v14 = vld [vmem:[#allocation5 + $0x60] ss:$8 sps:$4 sm:$0xff]   ;;  %v809_v15 = vld [vmem:[#allocation5 + $0x74] ss:$8 sps:$4 sm:$0xff]   ;;  %v811_v16 = vld [vmem:[#allocation5 + $0x70] ss:$8 sps:$4 sm:$0xff]  }
  0x70   : > { %382 = vmatpush1.bf16.msra.mxu0 %v793_v4  ;;  %v270_v17 = vld [vmem:[%s1196_s23] sm:$0xf]  ;;  %v812_v18 = vld [vmem:[#allocation7] sm:$0xff]   ;;  %v813_v20 = vld [vmem:[#allocation7 + $0x8] sm:$0xff]   ;;  %vm991_vm0 = vmmov 0   ;;  %v290_v28 = vshrl.u32 %v289_v27, 7 }
  0x71   : > { %383 = vmatprep.subr.bf16.mxu0 %v794_v5  ;;  %695 = vmatpush3.bf16.msra.mxu1 %v812_v18  ;;  %v814_v21 = vld [vmem:[#allocation7 + $0x10] sm:$0xff]   ;;  %v815_v22 = vld [vmem:[#allocation7 + $0x18] sm:$0xff]   ;;  %v816_v23 = vld [vmem:[#allocation7 + $0x20] sm:$0xff]   ;;  %s655_s10 = sshll.u32 %s1192_s14, 3  ;;  %s682_s13 = sshll.u32 %s1044_s22, 7 }
  0x72   : > { %696 = vmatprep.subr.bf16.mxu1 %v990_v19  ;;  %v817_v24 = vld [vmem:[#allocation7 + $0x28] sm:$0xff]   ;;  %v818_v25 = vld [vmem:[#allocation7 + $0x30] sm:$0xff]   ;;  %v819_v26 = vld [vmem:[#allocation7 + $0x38] sm:$0xff]   ;;  %710 = vmatprep.mubr.msk.bf16.mxu1 %vm991_vm0, %v990_v19  ;;  %v291_v29 = vsub.s32 0, %v290_v28  ;;  %v295_v41 = vsub.s32 1, %v290_v28  ;;  %s268_s7 = scalar_lea.vmem [#allocation8], %s655_s10  ;;  %s1218_s9 = scalar_lea.hbm %s1267_s5, %s682_s13 }
  0x73   : > { %v287_v30 = vld [vmem:[%s1264_s2] sm:$0x3]  ;;  %s555_s6 = sshll.u32 %s268_s7, 4  ;;  %s542_s11 = scalar_lea.sflag [#allocation4], %s1192_s14  ;;  %s1220_s6 = int_to_ptr.vmem [resolvable:$true] %s555_s6 }
  0x74   : > { %384 = vmatpush1.bf16.msra.mxu0 %v796_v6  ;;  %v292_v31 = vrot.slane %v287_v30, %v291_v29  ;;  %v296_v42 = vrot.slane %v287_v30, %v295_v41  ;;  %v672_v48 = vld [vmem:[%s1266_s4] ss:$0 sm:$0xff]  ;;  %s910_s22 = scalar_lea.vmem %s1220_s6, 128  ;;  %p1281_p0 = scmp.ne.s32.totalorder %s1276_s30, 0 }
  0x75   : > { %385 = vmatprep.subr.bf16.mxu0 %v797_v7  ;;  %697 = vmatpush3.bf16.msra.mxu1 %v813_v20  ;;  %p911_p11 = scmp.ne.s32.totalorder %s1220_s6, %s910_s22  ;;  %s992_s15 = smov [#allocation8]  }
  0x76   : > { %698 = vmatprep.subr.bf16.mxu1 %v990_v19  ;;  %s914_s17 = sshll.u32 %s992_s15, 4  ;;  %s915_s17 = int_to_ptr.vmem [resolvable:$false] %s914_s17 }
  0x77   : > { %p912_p1 = pnand %p911_p11, %p1281_p0  ;;  %s916_s23 = scalar_lea.vmem %s915_s17, 256 }
  0x78   : > { %386 = vmatpush1.bf16.msra.mxu0 %v799_v8  ;;  %p917_p5 = scmp.lt.s32.totalorder %s1220_s6, %s915_s17  ;;  %p918_p9 = scmp.lt.s32.totalorder %s916_s23, %s910_s22 }
  0x79   : > { %387 = vmatprep.subr.bf16.mxu0 %v800_v9  ;;  %699 = vmatpush3.bf16.msra.mxu1 %v814_v21  ;;  %p913_p3 = pneg %p912_p1 }
  0x7a   : > { %700 = vmatprep.subr.bf16.mxu1 %v990_v19  ;;  %p919_p12 = por %p918_p9, %p917_p5 }
  0x7c   : > { %388 = vmatpush1.bf16.msra.mxu0 %v802_v10  ;;  %p920_p2 = pnand %p919_p12, %p913_p3 }
  0x7d   : > { %389 = vmatprep.subr.bf16.mxu0 %v803_v11  ;;  %701 = vmatpush3.bf16.msra.mxu1 %v815_v22 }
  0x7e   : > { %702 = vmatprep.subr.bf16.mxu1 %v990_v19 }
  0x80   : > { %390 = vmatpush1.bf16.msra.mxu0 %v805_v12 }
  0x81   : > { %391 = vmatprep.subr.bf16.mxu0 %v806_v13  ;;  %703 = vmatpush3.bf16.msra.mxu1 %v816_v23 }
  0x82   : > { %704 = vmatprep.subr.bf16.mxu1 %v990_v19 }
  0x84   : > { %392 = vmatpush1.bf16.msra.mxu0 %v808_v14 }
  0x85   : > { %393 = vmatprep.subr.bf16.mxu0 %v809_v15  ;;  %705 = vmatpush3.bf16.msra.mxu1 %v817_v24 }
  0x86   : > { %706 = vmatprep.subr.bf16.mxu1 %v990_v19 }
  0x88   : > { %394 = vmatpush1.bf16.msra.mxu0 %v811_v16 }
  0x89   : > { %707 = vmatpush3.bf16.msra.mxu1 %v818_v25 }
  0x8a   : > { %708 = vmatprep.subr.bf16.mxu1 %v990_v19 }
  0x8b   : > { %412 = vmatmul.mubr.bf16.vlgmr.msra.gmra.mrb[0].mxu0 %v270_v17 }
  0x8d   : > { %709 = vmatpush3.bf16.msra.mxu1 %v819_v26 }
 0x15e   : > { %v413_v32 = vpop.f32.mrb[0].mxu0 }
 0x15f   : > { %v414_v33 = vadd.f32 %v413_v32, %v292_v31  ;;  %v415_v34 = vpop.f32.mrb[1].mxu0 }
 0x160   : > { %v417_v35 = vpop.f32.mrb[2].mxu0  ;;  %v416_v45 = vadd.f32 %v415_v34, %v296_v42 }
 0x161   : > { %v420_v36 = vsub.f32 0.0, %v414_v33  ;;  %v418_v37 = vpop.f32.mrb[3].mxu0 }
 0x163   : > { %v421_v38 = vmul.f32 1.442695, %v420_v36 }
 0x165   : > { %820 = vpow2.f32 %v421_v38 }
 0x16f   : > { %v821_v39 = vpop.eup %820 }
 0x170   : > { %v423_v40 = vadd.f32 1.0, %v821_v39 }
 0x172   : > { %822 = vrcp.f32 %v423_v40 }
 0x17c   : > { %v823_v43 = vpop.eup %822 }
 0x17d   : > { %v426_v44 = vmul.f32 %v823_v43, %v414_v33 }
 0x17f   : > { %v427_v46 = vmul.f32 %v426_v44, %v416_v45 }
 0x181   : > { %v428_v47 = vpack.c.bf16 %v427_v46, %v427_v46 }
 0x183   : > { %711 = vmatmul.mubr.bf16.vlgmr.msra.gmra.mrb[0].mxu1 %v428_v47 }
 0x256   : > { %v534_v49 = vpop.f32.mrb[0].mxu1 }
 0x257   : > { %v535_v50 = vadd.f32 %v672_v48, %v534_v49  ;;  %v712_v51 = vpop.f32.mrb[1].mxu1 }
 0x258   : > { %v537_v52 = vpop.f32.mrb[2].mxu1 }
 0x259   : > { %540 = vst [vmem:[%s268_s7] sm:$0xff] %v535_v50  ;;  %v713_v53 = vpop.f32.mrb[3].mxu1 }
 0x25a   : > { %923 = shalt.err (!%p920_p2)
}
 0x25b   : > { %s924_s14 = scalar_lea.hbm %s1218_s9, 128  ;;  %s928_s10 = scalar_lea.hbm %s1267_s5, 256 }
 0x25c   : > { %p925_p13 = scmp.ne.s32.totalorder %s1218_s9, %s924_s14  ;;  %p929_p4 = scmp.lt.u32.totalorder %s1218_s9, %s1267_s5 }
 0x25d   : > { %p930_p7 = scmp.lt.u32.totalorder %s928_s10, %s924_s14  ;;  %p932_p11 = scmp.lt.u32.totalorder %s924_s14, %s1218_s9 }
 0x25e   : > { %p926_p6 = pnand %p925_p13, %p1281_p0 }
 0x25f   : > { %p931_p8 = por %p930_p7, %p929_p4 }
 0x260   : > { %p927_p10 = pneg %p926_p6 }
 0x261   : > { %p933_p1 = por %p932_p11, %p931_p8 }
 0x263   : > { %p934_p3 = pnand %p933_p1, %p927_p10 }
 0x265   : > { %937 = shalt.err (!%p934_p3)
}
 0x266   : > { %724 = dma.vmem_to_hbm [thread:$0]  (%p1281_p0), %s1220_s6, 128, %s1218_s9, %s542_s11  }
 0x267 PF: > { %s567_s13 = sand.u32 1, %s968_s18   ;;  %p1282_p5 = scmp.ne.s32.totalorder %s1272_s25, 0 }
 0x268   : > { %p1283_p9 = scmp.ge.s32.totalorder %s980_s21, 2  ;;  %s568_s7 = scalar_lea.sflag [#allocation4], %s567_s13 }
 0x26a   : > { %p738_p12 = pnand %p1283_p9, %p1282_p5 }
 0x26c   : > { %963 = dma.done.wait (!%p738_p12), %s568_s7, 128  }
 0x26d   : > { %965 = vsyncadd (!%p738_p12), %s568_s7, 4294967168  ;;  %p19_p2 = scmp.ge.s32.totalorder %s1133_s16, 4   ;;  %s1284_s18 = smov %s972_s19 }
 0x26e   : > { %s1285_s19 = smov %s976_s20  ;;  %s1286_s20 = smov %s1142_s27 }
 0x26f   : > { %s1287_s21 = smov %s1133_s16  ;;  %21 = sbr.rel (!%p19_p2) target bundleno = 6 (0x6), region = 93 }
 0x276   :  { %573 = vsyncpa [#allocation3], 1 }
 0x277   :  { %575 = vsyncpa [#allocation3 + $0x1], 1 }
 0x278   :  { %576 = vsyncpa [#allocation6], 1 }
 0x279   :  { %577 = vsyncpa [#allocation4], 1 }
 0x27a   :  { %579 = vsyncpa [#allocation4 + $0x1], 1 }

</bundles_post_ra>
